<compile_context>
chip_gen: v7x
topology: tpu7x:2x2x1
jax: 0.10.0
libtpu: 0.0.40
codegen_flags: <defaults>
</compile_context>

<pallas_src>
import functools

import jax
import jax.numpy as jnp
from jax import lax
from jax.experimental import pallas as pl
from jax.experimental.pallas import tpu as pltpu


def _round_up(x, m):
    return ((x + m - 1) // m) * m


def _conditioner_kernel(H, xs_ref, k1_ref, b1_ref, k2_ref, b2_ref,
                        rowsel_ref, pw3_ref, b3_ref, w4_ref, b4_ref, out_ref):
    f32 = jnp.float32
    bf16 = jnp.bfloat16

    x = xs_ref[...]                                   # (R, lane_in) f32, R = B*H
    R = x.shape[0]

    # Edge masks: zero the wrapped row of each roll and isolate images in the batch.
    # (Replaces the old (R,R) shift matrices -> no MXU, no O(R^2) DMA.)
    r = lax.broadcasted_iota(jnp.int32, (R, 1), 0)
    m_up = (r % H != 0).astype(f32)                   # row r-1 exists within same image
    m_dn = (r % H != H - 1).astype(f32)               # row r+1 exists within same image

    # ---- conv1 (Cin -> C1, 3x3, pad=1) + ReLU : one bf16 MXU matmul ----
    # kw taps + horizontal zero-pad are folded into k1; kh taps come from sublane rolls.
    x_up = pltpu.roll(x, 1, 0) * m_up                 # row r <- row r-1 (else 0)
    x_dn = pltpu.roll(x, R - 1, 0) * m_dn             # row r <- row r+1 (else 0)
    lhs1 = jnp.concatenate([x_up, x, x_dn], axis=-1).astype(bf16)     # (R, 3*lane_in)
    acc1 = jnp.dot(lhs1, k1_ref[...], preferred_element_type=f32)     # (R, n1_pad)
    # h1 keeps a horizontally padded layout with exactly-zero border/pad column blocks
    # (zero weight columns + zero bias + ReLU) == conv2's horizontal zero padding.
    h1 = jnp.maximum(acc1 + b1_ref[...], 0.0)

    # ---- conv2 (C1 -> C2, 3x3, pad=1) + ReLU : one bf16 MXU matmul ----
    h1_up = pltpu.roll(h1, 1, 0) * m_up
    h1_dn = pltpu.roll(h1, R - 1, 0) * m_dn
    lhs2 = jnp.concatenate([h1_up, h1, h1_dn], axis=-1).astype(bf16)  # (R, 3*n1_pad)
    acc2 = jnp.dot(lhs2, k2_ref[...], preferred_element_type=f32)     # (R, W*C2)
    h2 = jnp.maximum(acc2 + b2_ref[...], 0.0)

    # ---- AdaptiveAvgPool2d(1) + fc (pool folded into row-select + fc1 weight) ----
    pooled = jnp.dot(rowsel_ref[...], h2, preferred_element_type=f32)           # (B, W*C2)
    z = jnp.maximum(jnp.dot(pooled, pw3_ref[...], preferred_element_type=f32)
                    + b3_ref[...], 0.0)                                          # (B, E)
    out_ref[...] = jnp.dot(z, w4_ref[...], preferred_element_type=f32) + b4_ref[...]


def prepare_prompt_conditioner(params, B, H, W):
    """One-time preprocessing of PyTorch-layout params into kernel operands."""
    w1, b1, w2, b2, fw1, fb1, fw2, fb2 = [jnp.asarray(p, jnp.float32) for p in params]
    C1, Cin = w1.shape[0], w1.shape[1]
    C2 = w2.shape[0]
    R = B * H
    lane_in = _round_up(W * Cin, 128)                 # lane-aligned input K per kh block
    n1 = (W + 2) * C1                                 # padded-h1 logical width (144)
    n1_pad = _round_up(n1, 128)                       # lane-dense h1 width (256)
    n2 = W * C2                                       # conv2 output width (256)

    # conv1: fold the 3 kw taps into one (W*Cin, n1_pad) matrix per kh, then concat the
    # 3 kh blocks along rows.  Output column blocks w'=0 and w'=W+1 (and the lane pad)
    # are all-zero -> they become conv2's horizontal zero padding after ReLU.
    colmask = jnp.zeros((W + 2,), jnp.float32).at[1:W + 1].set(1.0)
    k1_blocks = []
    for kh in range(3):
        K = jnp.zeros((W * Cin, n1_pad), jnp.float32)
        for kw in range(3):
            E1 = jnp.eye(W, W + 2, k=2 - kw, dtype=jnp.float32) * colmask[None, :]
            K = K.at[:, :n1].add(jnp.kron(E1, w1[:, :, kh, kw].T))
        K = jnp.pad(K, ((0, lane_in - W * Cin), (0, 0)))     # zero rows for x's lane pad
        k1_blocks.append(K)
    k1 = jnp.concatenate(k1_blocks, axis=0).astype(jnp.bfloat16)   # (3*lane_in, n1_pad)

    # conv2: reads the padded-h1 layout (n1_pad rows per kh block), writes unpadded W*C2.
    k2_blocks = []
    for kh in range(3):
        K = jnp.zeros((n1_pad, n2), jnp.float32)
        for kw in range(3):
            E2 = jnp.eye(W + 2, W, k=-kw, dtype=jnp.float32)
            K = K.at[:n1, :].add(jnp.kron(E2, w2[:, :, kh, kw].T))
        k2_blocks.append(K)
    k2 = jnp.concatenate(k2_blocks, axis=0).astype(jnp.bfloat16)   # (3*n1_pad, n2)

    # biases (conv1 bias is zero on border/pad blocks so ReLU keeps the padding at 0)
    b1_full = jnp.concatenate([jnp.zeros((C1,), jnp.float32), jnp.tile(b1, W),
                               jnp.zeros((C1,), jnp.float32)])
    b1w = jnp.pad(b1_full, (0, n1_pad - n1))[None, :]
    b2t = jnp.tile(b2, W)[None, :]

    # global average pool == per-batch row selection (x 1/(H*W)) folded into fc1 weight
    rr = jnp.arange(R)
    rowsel = ((rr[None, :] // H) == jnp.arange(B)[:, None]).astype(jnp.float32) / float(H * W)
    pw3 = jnp.tile(fw1.T, (W, 1))                                  # (W*C2, E)
    return (k1, b1w, k2, b2t, rowsel, pw3, fb1[None, :], fw2.T, fb2[None, :])


@jax.jit
def prompt_conditioner_pallas(x_nchw, prep):
    k1, b1w, k2, b2t, rowsel, pw3, b3, w4, b4 = prep
    B, Cin, H, W = x_nchw.shape
    E = w4.shape[1]
    lane_in = k1.shape[0] // 3
    n1_pad = k1.shape[1]
    n2 = k2.shape[1]
    R = B * H

    # Minimal per-call glue: NCHW -> (B*H, W*Cin) slab + one lane pad.
    xs = jnp.transpose(x_nchw, (0, 2, 3, 1)).astype(jnp.float32).reshape(R, W * Cin)
    xs = jnp.pad(xs, ((0, 0), (0, lane_in - W * Cin)))

    flops = (2 * R * (3 * lane_in * n1_pad + 3 * n1_pad * n2)
             + 2 * B * (R * n2 + n2 * E + E * E))
    operands = (xs, k1, b1w, k2, b2t, rowsel, pw3, b3, w4, b4)
    bytes_accessed = sum(int(a.size) * a.dtype.itemsize for a in operands) + B * E * 4

    vmem = pl.BlockSpec(memory_space=pltpu.MemorySpace.VMEM)
    kernel = functools.partial(_conditioner_kernel, H)
    return pl.pallas_call(
        kernel,
        out_shape=jax.ShapeDtypeStruct((B, E), jnp.float32),
        in_specs=[vmem] * len(operands),
        out_specs=vmem,
        cost_estimate=pl.CostEstimate(flops=flops, transcendentals=0,
                                      bytes_accessed=bytes_accessed),
    )(*operands)


def init_params(key, in_channels, embed_dim):
    ks = jax.random.split(key, 8)
    C1, C2, s = 8, 16, 0.1
    w1 = s * jax.random.normal(ks[0], (C1, in_channels, 3, 3), jnp.float32)
    b1 = s * jax.random.normal(ks[1], (C1,), jnp.float32)
    w2 = s * jax.random.normal(ks[2], (C2, C1, 3, 3), jnp.float32)
    b2 = s * jax.random.normal(ks[3], (C2,), jnp.float32)
    fw1 = s * jax.random.normal(ks[4], (embed_dim, C2), jnp.float32)
    fb1 = s * jax.random.normal(ks[5], (embed_dim,), jnp.float32)
    fw2 = s * jax.random.normal(ks[6], (embed_dim, embed_dim), jnp.float32)
    fb2 = s * jax.random.normal(ks[7], (embed_dim,), jnp.float32)
    return (w1, b1, w2, b2, fw1, fb1, fw2, fb2)


def reference(x, params):
    w1, b1, w2, b2, fw1, fb1, fw2, fb2 = params
    dn = ('NCHW', 'OIHW', 'NCHW')
    y = lax.conv_general_dilated(x, w1, (1, 1), 'SAME', dimension_numbers=dn)
    y = jnp.maximum(y + b1[None, :, None, None], 0.0)
    y = lax.conv_general_dilated(y, w2, (1, 1), 'SAME', dimension_numbers=dn)
    y = jnp.maximum(y + b2[None, :, None, None], 0.0)
    feat = jnp.mean(y, axis=(2, 3))
    z = jnp.maximum(feat @ fw1.T + fb1, 0.0)
    return z @ fw2.T + fb2


if __name__ == "__main__":
    key = jax.random.PRNGKey(0)
    k_x, k_p = jax.random.split(key)
    B, in_channels, H, W, embed_dim = 2, 4, 16, 16, 32

    x = jax.random.normal(k_x, (B, in_channels, H, W), jnp.float32)
    params = init_params(k_p, in_channels, embed_dim)

    prep = prepare_prompt_conditioner(params, B, H, W)   # one-time, cached across calls

    out = prompt_conditioner_pallas(x, prep)
    out = jax.block_until_ready(out)

    ref = jax.block_until_ready(reference(x, params))
    assert out.shape == (B, embed_dim)
    err = float(jnp.max(jnp.abs(out - ref)))
    assert err < 2e-2, f"mismatch vs reference: max abs err = {err}"
    print("KERNEL_OK")
</pallas_src>

<mosaic_0001>
module attributes {stable_mosaic.version = 11 : i64} {
  func.func @_conditioner_kernel(%arg0: memref<32x128xf32, #tpu.memory_space<vmem>>, %arg1: memref<384x256xbf16, #tpu.memory_space<vmem>>, %arg2: memref<1x256xf32, #tpu.memory_space<vmem>>, %arg3: memref<768x256xbf16, #tpu.memory_space<vmem>>, %arg4: memref<1x256xf32, #tpu.memory_space<vmem>>, %arg5: memref<2x32xf32, #tpu.memory_space<vmem>>, %arg6: memref<256x32xf32, #tpu.memory_space<vmem>>, %arg7: memref<1x32xf32, #tpu.memory_space<vmem>>, %arg8: memref<32x32xf32, #tpu.memory_space<vmem>>, %arg9: memref<1x32xf32, #tpu.memory_space<vmem>>, %arg10: memref<2x32xf32, #tpu.memory_space<vmem>>) attributes {dimension_semantics = [], scalar_prefetch = 0 : i64, scratch_operands = 0 : i64, tpu.core_type = #tpu.core_type<tc>} {
    %c0 = arith.constant 0 : index
    %c0_0 = arith.constant 0 : index
    %0 = vector.load %arg0[%c0, %c0_0] : memref<32x128xf32, #tpu.memory_space<vmem>>, vector<32x128xf32>
    %1 = tpu.iota {dimensions = array<i32: 0>} : vector<32x1xi32>
    %c16_i32 = arith.constant 16 : i32
    %c0_i32 = arith.constant 0 : i32
    %2 = arith.cmpi eq, %c16_i32, %c0_i32 : i32
    %c1_i32 = arith.constant 1 : i32
    %3 = arith.select %2, %c1_i32, %c16_i32 : i32
    %4 = vector.broadcast %3 : i32 to vector<32x1xi32>
    %5 = arith.remsi %1, %4 : vector<32x1xi32>
    %c0_i32_1 = arith.constant 0 : i32
    %6 = vector.broadcast %c0_i32_1 : i32 to vector<32x1xi32>
    %7 = arith.cmpi ne, %5, %6 : vector<32x1xi32>
    %c0_i32_2 = arith.constant 0 : i32
    %8 = vector.broadcast %c0_i32_2 : i32 to vector<32x1xi32>
    %9 = arith.cmpi slt, %5, %8 : vector<32x1xi32>
    %c0_i32_3 = arith.constant 0 : i32
    %10 = arith.cmpi slt, %3, %c0_i32_3 : i32
    %11 = vector.broadcast %10 : i1 to vector<32x1xi1>
    %12 = vector.broadcast %11 : vector<32x1xi1> to vector<32x1xi1>
    %13 = arith.xori %9, %12 : vector<32x1xi1>
    %14 = arith.andi %13, %7 : vector<32x1xi1>
    %15 = vector.broadcast %3 : i32 to vector<32x1xi32>
    %16 = arith.addi %5, %15 : vector<32x1xi32>
    %17 = arith.select %14, %16, %5 : vector<32x1xi1>, vector<32x1xi32>
    %c0_i32_4 = arith.constant 0 : i32
    %18 = vector.broadcast %c0_i32_4 : i32 to vector<32x1xi32>
    %19 = arith.cmpi ne, %17, %18 : vector<32x1xi32>
    %20 = arith.extui %19 : vector<32x1xi1> to vector<32x1xi32>
    %21 = arith.sitofp %20 : vector<32x1xi32> to vector<32x1xf32>
    %c16_i32_5 = arith.constant 16 : i32
    %c0_i32_6 = arith.constant 0 : i32
    %22 = arith.cmpi eq, %c16_i32_5, %c0_i32_6 : i32
    %c1_i32_7 = arith.constant 1 : i32
    %23 = arith.select %22, %c1_i32_7, %c16_i32_5 : i32
    %24 = vector.broadcast %23 : i32 to vector<32x1xi32>
    %25 = arith.remsi %1, %24 : vector<32x1xi32>
    %c0_i32_8 = arith.constant 0 : i32
    %26 = vector.broadcast %c0_i32_8 : i32 to vector<32x1xi32>
    %27 = arith.cmpi ne, %25, %26 : vector<32x1xi32>
    %c0_i32_9 = arith.constant 0 : i32
    %28 = vector.broadcast %c0_i32_9 : i32 to vector<32x1xi32>
    %29 = arith.cmpi slt, %25, %28 : vector<32x1xi32>
    %c0_i32_10 = arith.constant 0 : i32
    %30 = arith.cmpi slt, %23, %c0_i32_10 : i32
    %31 = vector.broadcast %30 : i1 to vector<32x1xi1>
    %32 = vector.broadcast %31 : vector<32x1xi1> to vector<32x1xi1>
    %33 = arith.xori %29, %32 : vector<32x1xi1>
    %34 = arith.andi %33, %27 : vector<32x1xi1>
    %35 = vector.broadcast %23 : i32 to vector<32x1xi32>
    %36 = arith.addi %25, %35 : vector<32x1xi32>
    %37 = arith.select %34, %36, %25 : vector<32x1xi1>, vector<32x1xi32>
    %c15_i32 = arith.constant 15 : i32
    %38 = vector.broadcast %c15_i32 : i32 to vector<32x1xi32>
    %39 = arith.cmpi ne, %37, %38 : vector<32x1xi32>
    %40 = arith.extui %39 : vector<32x1xi1> to vector<32x1xi32>
    %41 = arith.sitofp %40 : vector<32x1xi32> to vector<32x1xf32>
    %c1_i32_11 = arith.constant 1 : i32
    %42 = tpu.dynamic_rotate %0 by %c1_i32_11 dim 0 : vector<32x128xf32>, i32 -> vector<32x128xf32>
    %43 = vector.broadcast %21 : vector<32x1xf32> to vector<32x128xf32>
    %44 = arith.mulf %42, %43 : vector<32x128xf32>
    %c31_i32 = arith.constant 31 : i32
    %45 = tpu.dynamic_rotate %0 by %c31_i32 dim 0 : vector<32x128xf32>, i32 -> vector<32x128xf32>
    %46 = vector.broadcast %41 : vector<32x1xf32> to vector<32x128xf32>
    %47 = arith.mulf %45, %46 : vector<32x128xf32>
    %48 = tpu.concatenate %44, %0, %47 in 1 : vector<32x128xf32>, vector<32x128xf32>, vector<32x128xf32> -> vector<32x384xf32>
    %49 = arith.truncf %48 : vector<32x384xf32> to vector<32x384xbf16>
    %c0_12 = arith.constant 0 : index
    %c0_13 = arith.constant 0 : index
    %50 = vector.load %arg1[%c0_12, %c0_13] : memref<384x256xbf16, #tpu.memory_space<vmem>>, vector<384x256xbf16>
    %cst = arith.constant dense<0.000000e+00> : vector<32x256xf32>
    %51 = tpu.matmul %49, %50, %cst {dimension_numbers = #tpu.dot_dimension_numbers<[1], [0], [0], [1], [0, 0, 1, 1], [], []>} : vector<32x384xbf16>, vector<384x256xbf16>, vector<32x256xf32> -> vector<32x256xf32>
    %c0_14 = arith.constant 0 : index
    %c0_15 = arith.constant 0 : index
    %52 = vector.load %arg2[%c0_14, %c0_15] : memref<1x256xf32, #tpu.memory_space<vmem>>, vector<1x256xf32>
    %53 = vector.broadcast %52 : vector<1x256xf32> to vector<32x256xf32>
    %54 = arith.addf %51, %53 : vector<32x256xf32>
    %cst_16 = arith.constant 0.000000e+00 : f32
    %55 = vector.broadcast %cst_16 : f32 to vector<32x256xf32>
    %56 = arith.maximumf %54, %55 : vector<32x256xf32>
    %c1_i32_17 = arith.constant 1 : i32
    %57 = tpu.dynamic_rotate %56 by %c1_i32_17 dim 0 : vector<32x256xf32>, i32 -> vector<32x256xf32>
    %58 = vector.broadcast %21 : vector<32x1xf32> to vector<32x256xf32>
    %59 = arith.mulf %57, %58 : vector<32x256xf32>
    %c31_i32_18 = arith.constant 31 : i32
    %60 = tpu.dynamic_rotate %56 by %c31_i32_18 dim 0 : vector<32x256xf32>, i32 -> vector<32x256xf32>
    %61 = vector.broadcast %41 : vector<32x1xf32> to vector<32x256xf32>
    %62 = arith.mulf %60, %61 : vector<32x256xf32>
    %63 = tpu.concatenate %59, %56, %62 in 1 : vector<32x256xf32>, vector<32x256xf32>, vector<32x256xf32> -> vector<32x768xf32>
    %64 = arith.truncf %63 : vector<32x768xf32> to vector<32x768xbf16>
    %c0_19 = arith.constant 0 : index
    %c0_20 = arith.constant 0 : index
    %65 = vector.load %arg3[%c0_19, %c0_20] : memref<768x256xbf16, #tpu.memory_space<vmem>>, vector<768x256xbf16>
    %cst_21 = arith.constant dense<0.000000e+00> : vector<32x256xf32>
    %66 = tpu.matmul %64, %65, %cst_21 {dimension_numbers = #tpu.dot_dimension_numbers<[1], [0], [0], [1], [0, 0, 1, 1], [], []>} : vector<32x768xbf16>, vector<768x256xbf16>, vector<32x256xf32> -> vector<32x256xf32>
    %c0_22 = arith.constant 0 : index
    %c0_23 = arith.constant 0 : index
    %67 = vector.load %arg4[%c0_22, %c0_23] : memref<1x256xf32, #tpu.memory_space<vmem>>, vector<1x256xf32>
    %68 = vector.broadcast %67 : vector<1x256xf32> to vector<32x256xf32>
    %69 = arith.addf %66, %68 : vector<32x256xf32>
    %cst_24 = arith.constant 0.000000e+00 : f32
    %70 = vector.broadcast %cst_24 : f32 to vector<32x256xf32>
    %71 = arith.maximumf %69, %70 : vector<32x256xf32>
    %c0_25 = arith.constant 0 : index
    %c0_26 = arith.constant 0 : index
    %72 = vector.load %arg5[%c0_25, %c0_26] : memref<2x32xf32, #tpu.memory_space<vmem>>, vector<2x32xf32>
    %cst_27 = arith.constant dense<0.000000e+00> : vector<2x256xf32>
    %73 = tpu.matmul %72, %71, %cst_27 {dimension_numbers = #tpu.dot_dimension_numbers<[1], [0], [0], [1], [0, 0, 1, 1], [], []>} : vector<2x32xf32>, vector<32x256xf32>, vector<2x256xf32> -> vector<2x256xf32>
    %c0_28 = arith.constant 0 : index
    %c0_29 = arith.constant 0 : index
    %74 = vector.load %arg6[%c0_28, %c0_29] : memref<256x32xf32, #tpu.memory_space<vmem>>, vector<256x32xf32>
    %cst_30 = arith.constant dense<0.000000e+00> : vector<2x32xf32>
    %75 = tpu.matmul %73, %74, %cst_30 {dimension_numbers = #tpu.dot_dimension_numbers<[1], [0], [0], [1], [0, 0, 1, 1], [], []>} : vector<2x256xf32>, vector<256x32xf32>, vector<2x32xf32> -> vector<2x32xf32>
    %c0_31 = arith.constant 0 : index
    %c0_32 = arith.constant 0 : index
    %76 = vector.load %arg7[%c0_31, %c0_32] : memref<1x32xf32, #tpu.memory_space<vmem>>, vector<1x32xf32>
    %77 = vector.broadcast %76 : vector<1x32xf32> to vector<2x32xf32>
    %78 = arith.addf %75, %77 : vector<2x32xf32>
    %cst_33 = arith.constant 0.000000e+00 : f32
    %79 = vector.broadcast %cst_33 : f32 to vector<2x32xf32>
    %80 = arith.maximumf %78, %79 : vector<2x32xf32>
    %c0_34 = arith.constant 0 : index
    %c0_35 = arith.constant 0 : index
    %81 = vector.load %arg8[%c0_34, %c0_35] : memref<32x32xf32, #tpu.memory_space<vmem>>, vector<32x32xf32>
    %cst_36 = arith.constant dense<0.000000e+00> : vector<2x32xf32>
    %82 = tpu.matmul %80, %81, %cst_36 {dimension_numbers = #tpu.dot_dimension_numbers<[1], [0], [0], [1], [0, 0, 1, 1], [], []>} : vector<2x32xf32>, vector<32x32xf32>, vector<2x32xf32> -> vector<2x32xf32>
    %c0_37 = arith.constant 0 : index
    %c0_38 = arith.constant 0 : index
    %83 = vector.load %arg9[%c0_37, %c0_38] : memref<1x32xf32, #tpu.memory_space<vmem>>, vector<1x32xf32>
    %84 = vector.broadcast %83 : vector<1x32xf32> to vector<2x32xf32>
    %85 = arith.addf %82, %84 : vector<2x32xf32>
    %c0_39 = arith.constant 0 : index
    %c0_40 = arith.constant 0 : index
    %86 = vector.load %arg10[%c0_39, %c0_40] : memref<2x32xf32, #tpu.memory_space<vmem>>, vector<2x32xf32>
    tpu.vector_store %arg10[%c0_39, %c0_40], %85 {strides = array<i32>} : memref<2x32xf32, #tpu.memory_space<vmem>>, vector<2x32xf32>,
    return
  }
}

</mosaic_0001>

<bundles_post_ra>
// kernel: prompt_conditioner_pallas.1
= control target key start
LH: loop header
LB: loop body
LE: loop exit
PB: predicated region body
PF: predicated region fallthrough
CT: control target
= control target key end

     0   :  { %15 = vsyncpa [#allocation3], 0  ;;  %s2970_s0 = inlined_call_operand.vmem [shape: f32[32,128], index: 0, kind: input, shape index: {}]   ;;  %s2971_s1 = inlined_call_operand.hbm [shape: bf16[384,256], index: 1, kind: input, shape index: {}]   ;;  %s2972_s2 = inlined_call_operand.vmem [shape: f32[1,256], index: 2, kind: input, shape index: {}]   ;;  %s2973_s3 = inlined_call_operand.vmem [shape: bf16[768,256], index: 3, kind: input, shape index: {}]   ;;  %s2974_s4 = inlined_call_operand.vmem [shape: f32[1,256], index: 4, kind: input, shape index: {}]   ;;  %s2975_s5 = inlined_call_operand.vmem [shape: f32[2,32], index: 5, kind: input, shape index: {}]   ;;  %s2976_s6 = inlined_call_operand.vmem [shape: f32[256,32], index: 6, kind: input, shape index: {}]   ;;  %s2977_s7 = inlined_call_operand.vmem [shape: f32[1,32], index: 7, kind: input, shape index: {}]   ;;  %s2978_s8 = inlined_call_operand.vmem [shape: f32[32,32], index: 8, kind: input, shape index: {}]   ;;  %s2979_s9 = inlined_call_operand.vmem [shape: f32[1,32], index: 9, kind: input, shape index: {}]   ;;  %s2980_s10 = inlined_call_operand.hbm [shape: f32[2,32], index: 10, kind: output, shape index: {}]  }
   0x1   :  { %16 = vsyncpa [#allocation4], 0  ;;  %s2241_s13 = smov [#allocation2]   ;;  %s2193_s17 = scalar_lea.hbm %s2971_s1, 6144 }
   0x2   :  { %s24_s14 = sshll.u32 %s2241_s13, 4  ;;  %p2194_p0 = scmp.ne.s32.totalorder %s2971_s1, %s2193_s17  ;;  %s25_s14 = int_to_ptr.vmem [resolvable:$true] %s24_s14 }
   0x3   :  { %p2197_p1 = scmp.lt.u32.totalorder %s2193_s17, %s2971_s1 }
   0x5   :  { %p2199_p2 = pnand %p2197_p1, %p2194_p0 }
   0x7   :  { %2202 = shalt.err (!%p2199_p2)
}
   0x8   :  { %s2203_s22 = scalar_lea.vmem %s25_s14, 6144  ;;  %p2208_p4 = scmp.lt.s32.totalorder %s25_s14, %s25_s14 }
   0x9   :  { %p2204_p3 = scmp.ne.s32.totalorder %s25_s14, %s2203_s22  ;;  %p2209_p5 = scmp.lt.s32.totalorder %s2203_s22, %s2203_s22 }
   0xb   :  { %p2210_p6 = por %p2209_p5, %p2208_p4 }
   0xd   :  { %p2211_p7 = pnand %p2210_p6, %p2204_p3 }
   0xf   :  { %2214 = shalt.err (!%p2211_p7)
}
  0x10   :  { %s2242_s23 = smov 128   ;;  %s2243_s24 = smov 8  }
  0x11   :  { %30 = dma.hbm_to_vmem [thread:$0]  %s2971_s1, 6144, %s25_s14, [#allocation3], %s2242_s23, %s2242_s23, %s2243_s24  }
  0x12   :  { %2237 = dma.done.wait [#allocation3], 6144  }
  0x13   :  { %2238 = vsyncadd [#allocation3], 4294961152  ;;  %v1977_v0 = vld [vmem:[#allocation2 + $0x4] ss:$8 sps:$4 sm:$0xff]   ;;  %v1979_v1 = vld [vmem:[#allocation2] ss:$8 sps:$4 sm:$0xff]   ;;  %v55_v9 = vlaneseq }
  0x14   :  { %464 = vmatprep.subr.bf16.mxu0 %v1977_v0  ;;  %v1980_v2 = vld [vmem:[#allocation2 + $0x14] ss:$8 sps:$4 sm:$0xff]   ;;  %v1982_v3 = vld [vmem:[#allocation2 + $0x10] ss:$8 sps:$4 sm:$0xff]   ;;  %v1983_v4 = vld [vmem:[#allocation2 + $0x24] ss:$8 sps:$4 sm:$0xff]  }
  0x15   :  { %465 = vmatpush1.bf16.msra.mxu0 %v1979_v1  ;;  %v1985_v5 = vld [vmem:[#allocation2 + $0x20] ss:$8 sps:$4 sm:$0xff]   ;;  %v1986_v6 = vld [vmem:[#allocation2 + $0x34] ss:$8 sps:$4 sm:$0xff]   ;;  %v1988_v7 = vld [vmem:[#allocation2 + $0x30] ss:$8 sps:$4 sm:$0xff]  }
  0x16   :  { %466 = vmatprep.subr.bf16.mxu0 %v1980_v2  ;;  %v1989_v8 = vld [vmem:[#allocation2 + $0x44] ss:$8 sps:$4 sm:$0xff]   ;;  %v1991_v10 = vld [vmem:[#allocation2 + $0x40] ss:$8 sps:$4 sm:$0xff]   ;;  %v1992_v11 = vld [vmem:[#allocation2 + $0x54] ss:$8 sps:$4 sm:$0xff]  }
  0x17   :  { %v2316_v12 = vshrl.u32 %v55_v9, 7  ;;  %v1994_v13 = vld [vmem:[#allocation2 + $0x50] ss:$8 sps:$4 sm:$0xff]   ;;  %v1995_v14 = vld [vmem:[#allocation2 + $0x64] ss:$8 sps:$4 sm:$0xff]   ;;  %v2244_v30 = vmov 0.0  }
  0x18   :  { %v2322_v16 = vld [vmem:[%s2970_s0] sm:$0xff]  ;;  %v2327_v17 = vld [vmem:[%s2970_s0 + $0x8] sm:$0xff]  ;;  %v1998_v22 = vld [vmem:[#allocation2 + $0x74] ss:$8 sps:$4 sm:$0xff]   ;;  %vm1394_vm6 = vcmask 261120   ;;  %vm2247_vm7 = vmmov 0  }
  0x19   :  { %467 = vmatpush1.bf16.msra.mxu0 %v1982_v3  ;;  %v57_v15 = vadd.s32 8, %v2316_v12  ;;  %v145_v18 = vrot.slane %v2322_v16, 1  ;;  %v146_v19 = vrot.slane %v2327_v17, 1  ;;  %v1997_v20 = vld [vmem:[#allocation2 + $0x60] ss:$8 sps:$4 sm:$0xff]   ;;  %vm149_vm0 = vcmp.lt.s32.totalorder %v2316_v12, 7 }
  0x1a   :  { %468 = vmatprep.subr.bf16.mxu0 %v1983_v4  ;;  %v159_v21 = vpack.c.bf16 %v2327_v17, %v2322_v16  ;;  %v2000_v25 = vld [vmem:[#allocation2 + $0x70] ss:$8 sps:$4 sm:$0xff]   ;;  %v2001_v26 = vld [vmem:[#allocation2 + $0x84] ss:$8 sps:$4 sm:$0xff]   ;;  %v2003_v28 = vld [vmem:[#allocation2 + $0x80] ss:$8 sps:$4 sm:$0xff]  }
  0x1b   :  { %v2338_v23 = vsel %vm149_vm0, %v145_v18, %v146_v19  ;;  %v71_v24 = vand.u32 15, %v57_v15  ;;  %v2343_v27 = vld [vmem:[%s2970_s0 + $0x10] sm:$0xff]  ;;  %v2049_v36 = vld [vmem:[%s2973_s3 + $0x4] ss:$8 sps:$4 sm:$0xff]   ;;  %v2051_v37 = vld [vmem:[%s2973_s3] ss:$8 sps:$4 sm:$0xff]  }
  0x1c   :  { %496 = vmatprep.mubr.bf16.mxu0 %v159_v21  ;;  %v147_v29 = vrot.slane %v2343_v27, 1  ;;  %v2004_v32 = vld [vmem:[#allocation2 + $0x94] ss:$8 sps:$4 sm:$0xff]   ;;  %v2006_v33 = vld [vmem:[#allocation2 + $0x90] ss:$8 sps:$4 sm:$0xff]   ;;  %1226 = vmatprep.subr.bf16.mxu1 %v2049_v36  ;;  %v64_v55 = vand.u32 15, %v2316_v12 }
  0x1d   :  { %469 = vmatpush1.bf16.msra.mxu0 %v1985_v5  ;;  %vm121_vm1 = vcmp.ne.s32.totalorder %v71_v24, 15  ;;  %v2052_v38 = vld [vmem:[%s2973_s3 + $0x14] ss:$8 sps:$4 sm:$0xff]   ;;  %v2007_v39 = vld [vmem:[#allocation2 + $0xa4] ss:$8 sps:$4 sm:$0xff]   ;;  %1227 = vmatpush1.bf16.msra.mxu1 %v2051_v37  ;;  %v132_v59 = vrot.slane %v2322_v16, 7 }
  0x1e   :  { %470 = vmatprep.subr.bf16.mxu0 %v1986_v6  ;;  %v2347_v31 = vsel %vm121_vm1, 1.0, %v2244_v30  ;;  %v151_v34 = vsel %vm149_vm0, %v146_v19, %v147_v29  ;;  %v2054_v41 = vld [vmem:[%s2973_s3 + $0x10] ss:$8 sps:$4 sm:$0xff]   ;;  %1228 = vmatprep.subr.bf16.mxu1 %v2052_v38  ;;  %v2055_v42 = vld [vmem:[%s2973_s3 + $0x24] ss:$8 sps:$4 sm:$0xff]   ;;  %vm108_vm2 = vcmp.ne.s32.totalorder %v64_v55, 0 }
  0x1f   :  { %v2354_v35 = vmul.f32 %v2347_v31, %v151_v34  ;;  %v2009_v43 = vld [vmem:[#allocation2 + $0xa0] ss:$8 sps:$4 sm:$0xff]   ;;  %v2010_v44 = vld [vmem:[#allocation2 + $0xb4] ss:$8 sps:$4 sm:$0xff]   ;;  %v2012_v47 = vld [vmem:[#allocation2 + $0xb0] ss:$8 sps:$4 sm:$0xff]  }
  0x20   :  { %v2057_v45 = vld [vmem:[%s2973_s3 + $0x20] ss:$8 sps:$4 sm:$0xff]   ;;  %v2058_v46 = vld [vmem:[%s2973_s3 + $0x34] ss:$8 sps:$4 sm:$0xff]   ;;  %v2013_v48 = vld [vmem:[#allocation2 + $0xc4] ss:$8 sps:$4 sm:$0xff]  }
  0x21   :  { %471 = vmatpush1.bf16.msra.mxu0 %v1988_v7  ;;  %v160_v40 = vpack.c.bf16 %v2354_v35, %v2338_v23  ;;  %1229 = vmatpush1.bf16.msra.mxu1 %v2054_v41  ;;  %v2015_v49 = vld [vmem:[#allocation2 + $0xc0] ss:$8 sps:$4 sm:$0xff]   ;;  %v2060_v50 = vld [vmem:[%s2973_s3 + $0x30] ss:$8 sps:$4 sm:$0xff]   ;;  %v2016_v51 = vld [vmem:[#allocation2 + $0xd4] ss:$8 sps:$4 sm:$0xff]  }
  0x22   :  { %472 = vmatprep.subr.bf16.mxu0 %v1989_v8  ;;  %1230 = vmatprep.subr.bf16.mxu1 %v2055_v42  ;;  %v2385_v52 = vld [vmem:[%s2970_s0 + $0x18] sm:$0xff]  ;;  %v2061_v53 = vld [vmem:[%s2973_s3 + $0x44] ss:$8 sps:$4 sm:$0xff]   ;;  %v2063_v54 = vld [vmem:[%s2973_s3 + $0x40] ss:$8 sps:$4 sm:$0xff]   ;;  %vm136_vm3 = vcmp.lt.s32.totalorder %v2316_v12, 1 }
  0x23   :  { %v2064_v56 = vld [vmem:[%s2973_s3 + $0x54] ss:$8 sps:$4 sm:$0xff]   ;;  %v2018_v57 = vld [vmem:[#allocation2 + $0xd0] ss:$8 sps:$4 sm:$0xff]   ;;  %v2019_v58 = vld [vmem:[#allocation2 + $0xe4] ss:$8 sps:$4 sm:$0xff]   ;;  %v162_v21 = vpack.c.bf16 %v2385_v52, %v2343_v27 }
  0x24   :  { %v135_v60 = vrot.slane %v2385_v52, 7  ;;  %v2066_v61 = vld [vmem:[%s2973_s3 + $0x50] ss:$8 sps:$4 sm:$0xff]   ;;  %v58_v62 = vadd.s32 16, %v2316_v12  ;;  %v2067_v63 = vld [vmem:[%s2973_s3 + $0x64] ss:$8 sps:$4 sm:$0xff]  }
  0x25   :  { %473 = vmatpush1.bf16.msra.mxu0 %v1991_v10  ;;  %1231 = vmatpush1.bf16.msra.mxu1 %v2057_v45  ;;  %v2021_v0 = vld [vmem:[#allocation2 + $0xe0] ss:$8 sps:$4 sm:$0xff]   ;;  %v2022_v1 = vld [vmem:[#allocation2 + $0xf4] ss:$8 sps:$4 sm:$0xff]   ;;  %v133_v2 = vrot.slane %v2327_v17, 7  ;;  %v2409_v3 = vsel %vm108_vm2, 1.0, %v2244_v30 }
  0x26   :  { %474 = vmatprep.subr.bf16.mxu0 %v1992_v11  ;;  %1232 = vmatprep.subr.bf16.mxu1 %v2058_v46  ;;  %v140_v4 = vsel %vm136_vm3, %v135_v60, %v132_v59  ;;  %v2069_v5 = vld [vmem:[%s2973_s3 + $0x60] ss:$8 sps:$4 sm:$0xff]   ;;  %v78_v6 = vand.u32 15, %v58_v62  ;;  %v2070_v7 = vld [vmem:[%s2973_s3 + $0x74] ss:$8 sps:$4 sm:$0xff]   ;;  %v148_v55 = vrot.slane %v2385_v52, 1 }
  0x27   :  { %v2024_v8 = vld [vmem:[#allocation2 + $0xf0] ss:$8 sps:$4 sm:$0xff]   ;;  %v2027_v9 = vld [vmem:[#allocation2 + $0x104] ss:$8 sps:$4 sm:$0xff]   ;;  %v141_v10 = vmul.f32 %v2409_v3, %v140_v4  ;;  %v139_v11 = vsel %vm136_vm3, %v132_v59, %v133_v2  ;;  %v2025_v17 = vld [vmem:[#allocation2 + $0x100] ss:$8 sps:$4 sm:$0xff]  }
  0x28   :  { %vm110_vm4 = vcmp.ne.s32.totalorder %v78_v6, 0  ;;  %v2073_v15 = vld [vmem:[%s2973_s3 + $0x84] ss:$8 sps:$4 sm:$0xff]   ;;  %v2078_v36 = vld [vmem:[%s2973_s3 + $0x90] ss:$8 sps:$4 sm:$0xff]   ;;  %v150_v52 = vsel %vm149_vm0, %v147_v29, %v148_v55  ;;  %v220_v4 = vsub.s32 1, %v2316_v12 }
  0x29   :  { %475 = vmatpush1.bf16.msra.mxu0 %v1994_v13  ;;  %1233 = vmatpush1.bf16.msra.mxu1 %v2060_v50  ;;  %v134_v13 = vrot.slane %v2343_v27, 7  ;;  %v158_v19 = vpack.c.bf16 %v139_v11, %v141_v10  ;;  %v2079_v37 = vld [vmem:[%s2973_s3 + $0xa4] ss:$8 sps:$4 sm:$0xff]   ;;  %v2031_v38 = vld [vmem:[#allocation2 + $0x120] ss:$8 sps:$4 sm:$0xff]   ;;  %vm1663_vm8 = vcmask 254976  }
  0x2a   :  { %476 = vmatprep.subr.bf16.mxu0 %v1995_v14  ;;  %1234 = vmatprep.subr.bf16.mxu1 %v2061_v53  ;;  %v2072_v14 = vld [vmem:[%s2973_s3 + $0x70] ss:$8 sps:$4 sm:$0xff]   ;;  %v2037_v45 = vld [vmem:[#allocation2 + $0x140] ss:$8 sps:$4 sm:$0xff]   ;;  %v2042_v46 = vld [vmem:[#allocation2 + $0x154] ss:$8 sps:$4 sm:$0xff]  }
  0x2b   :  { %v138_v24 = vsel %vm136_vm3, %v133_v2, %v134_v13  ;;  %v137_v34 = vsel %vm136_vm3, %v134_v13, %v135_v60  ;;  %v2034_v42 = vld [vmem:[#allocation2 + $0x130] ss:$8 sps:$4 sm:$0xff]   ;;  %v2043_v50 = vld [vmem:[#allocation2 + $0x160] ss:$8 sps:$4 sm:$0xff]   ;;  %v2085_v27 = vld [vmem:[%s2973_s3 + $0xc4] ss:$8 sps:$4 sm:$0xff]  }
  0x2c   :  { %v2081_v16 = vld [vmem:[%s2973_s3 + $0xa0] ss:$8 sps:$4 sm:$0xff]   ;;  %v2084_v23 = vld [vmem:[%s2973_s3 + $0xb0] ss:$8 sps:$4 sm:$0xff]   ;;  %v2088_v35 = vld [vmem:[%s2973_s3 + $0xd4] ss:$8 sps:$4 sm:$0xff]  }
  0x2d   :  { %477 = vmatpush1.bf16.msra.mxu0 %v1997_v20  ;;  %1235 = vmatpush1.bf16.msra.mxu1 %v2063_v54  ;;  %v2030_v20 = vld [vmem:[#allocation2 + $0x114] ss:$8 sps:$4 sm:$0xff]   ;;  %v2046_v54 = vld [vmem:[#allocation2 + $0x170] ss:$8 sps:$4 sm:$0xff]   ;;  %v2087_v29 = vld [vmem:[%s2973_s3 + $0xc0] ss:$8 sps:$4 sm:$0xff]  }
  0x2e   :  { %478 = vmatprep.subr.bf16.mxu0 %v1998_v22  ;;  %1236 = vmatprep.subr.bf16.mxu1 %v2064_v56  ;;  %v2432_v22 = vsel %vm110_vm4, 1.0, %v2244_v30  ;;  %v2091_v60 = vld [vmem:[%s2973_s3 + $0xe4] ss:$8 sps:$4 sm:$0xff]   ;;  %v2094_v62 = vld [vmem:[%s2973_s3 + $0xf4] ss:$8 sps:$4 sm:$0xff]  }
  0x2f   :  { %v212_v2 = vld [vmem:[%s2972_s2] sm:$0x3] }
  0x30   :  { %v221_v6 = vrot.slane %v212_v2, %v220_v4 }
  0x31   :  { %479 = vmatpush1.bf16.msra.mxu0 %v2000_v25  ;;  %1237 = vmatpush1.bf16.msra.mxu1 %v2066_v61  ;;  %v2075_v25 = vld [vmem:[%s2973_s3 + $0x80] ss:$8 sps:$4 sm:$0xff]  }
  0x32   :  { %480 = vmatprep.subr.bf16.mxu0 %v2001_v26  ;;  %1238 = vmatprep.subr.bf16.mxu1 %v2067_v63  ;;  %v2076_v26 = vld [vmem:[%s2973_s3 + $0x94] ss:$8 sps:$4 sm:$0xff]   ;;  %v2093_v61 = vld [vmem:[%s2973_s3 + $0xe0] ss:$8 sps:$4 sm:$0xff]   ;;  %v2096_v63 = vld [vmem:[%s2973_s3 + $0xf0] ss:$8 sps:$4 sm:$0xff]  }
  0x35   :  { %481 = vmatpush1.bf16.msra.mxu0 %v2003_v28  ;;  %1239 = vmatpush1.bf16.msra.mxu1 %v2069_v5  ;;  %v2028_v28 = vld [vmem:[#allocation2 + $0x110] ss:$8 sps:$4 sm:$0xff]  }
  0x36   :  { %482 = vmatprep.subr.bf16.mxu0 %v2004_v32  ;;  %1240 = vmatprep.subr.bf16.mxu1 %v2070_v7  ;;  %v2033_v32 = vld [vmem:[#allocation2 + $0x124] ss:$8 sps:$4 sm:$0xff]  }
  0x39   :  { %483 = vmatpush1.bf16.msra.mxu0 %v2006_v33  ;;  %1241 = vmatpush1.bf16.msra.mxu1 %v2072_v14  ;;  %v143_v33 = vmul.f32 %v2432_v22, %v138_v24 }
  0x3a   :  { %484 = vmatprep.subr.bf16.mxu0 %v2007_v39  ;;  %1242 = vmatprep.subr.bf16.mxu1 %v2073_v15  ;;  %v2036_v39 = vld [vmem:[#allocation2 + $0x134] ss:$8 sps:$4 sm:$0xff]  }
  0x3b   :  { %v161_v41 = vpack.c.bf16 %v137_v34, %v143_v33 }
  0x3d   :  { %485 = vmatpush1.bf16.msra.mxu0 %v2009_v43  ;;  %1243 = vmatpush1.bf16.msra.mxu1 %v2075_v25  ;;  %v2245_v43 = vmov 0  }
  0x3e   :  { %486 = vmatprep.subr.bf16.mxu0 %v2010_v44  ;;  %1244 = vmatprep.subr.bf16.mxu1 %v2076_v26  ;;  %v2039_v44 = vld [vmem:[#allocation2 + $0x144] ss:$8 sps:$4 sm:$0xff]  }
  0x41   :  { %487 = vmatpush1.bf16.msra.mxu0 %v2012_v47  ;;  %1245 = vmatpush1.bf16.msra.mxu1 %v2078_v36  ;;  %v2040_v47 = vld [vmem:[#allocation2 + $0x150] ss:$8 sps:$4 sm:$0xff]  }
  0x42   :  { %488 = vmatprep.subr.bf16.mxu0 %v2013_v48  ;;  %1246 = vmatprep.subr.bf16.mxu1 %v2079_v37  ;;  %v2045_v48 = vld [vmem:[#allocation2 + $0x164] ss:$8 sps:$4 sm:$0xff]  }
  0x45   :  { %489 = vmatpush1.bf16.msra.mxu0 %v2015_v49  ;;  %v59_v49 = vadd.s32 24, %v2316_v12  ;;  %1247 = vmatpush1.bf16.msra.mxu1 %v2081_v16 }
  0x46   :  { %490 = vmatprep.subr.bf16.mxu0 %v2016_v51  ;;  %v2048_v51 = vld [vmem:[#allocation2 + $0x174] ss:$8 sps:$4 sm:$0xff]  }
  0x47   :  { %v85_v53 = vand.u32 15, %v59_v49 }
  0x49   :  { %491 = vmatpush1.bf16.msra.mxu0 %v2018_v57  ;;  %vm123_vm5 = vcmp.ne.s32.totalorder %v85_v53, 15  ;;  %v153_v57 = vsel %vm149_vm0, %v148_v55, %v145_v18  ;;  %v2082_v18 = vld [vmem:[%s2973_s3 + $0xb4] ss:$8 sps:$4 sm:$0xff]  }
  0x4a   :  { %492 = vmatprep.subr.bf16.mxu0 %v2019_v58  ;;  %v2454_v56 = vsel %vm123_vm5, 1.0, %v2244_v30  ;;  %1248 = vmatprep.subr.bf16.mxu1 %v2082_v18 }
  0x4b   :  { %v157_v58 = vmul.f32 %v2454_v56, %v153_v57  ;;  %1249 = vmatpush1.bf16.msra.mxu1 %v2084_v23 }
  0x4c   :  { %1250 = vmatprep.subr.bf16.mxu1 %v2085_v27 }
  0x4d   :  { %493 = vmatpush1.bf16.msra.mxu0 %v2021_v0  ;;  %v163_v59 = vpack.c.bf16 %v157_v58, %v150_v52  ;;  %v2099_v0 = vld [vmem:[%s2973_s3 + $0x104] ss:$8 sps:$4 sm:$0xff]  }
  0x4e   :  { %494 = vmatprep.subr.bf16.mxu0 %v2022_v1  ;;  %v216_v1 = vsub.s32 0, %v2316_v12 }
  0x4f   :  { %1251 = vmatpush1.bf16.msra.mxu1 %v2087_v29 }
  0x50   :  { %1252 = vmatprep.subr.bf16.mxu1 %v2088_v35  ;;  %v217_v5 = vrot.slane %v212_v2, %v216_v1 }
  0x51   :  { %495 = vmatpush1.bf16.msra.mxu0 %v2024_v8 }
  0x52   :  { %517 = vmatprep.subr.bf16.mxu0 %v2027_v9 }
  0x54   :  { %497 = vmatmul.mubr.bf16.vlgmr.msra.gmra.mrb[0].mxu0 %v158_v19 }
  0x55   :  { %518 = vmatpush1.bf16.msra.mxu0 %v2025_v17  ;;  %506 = vmatprep.mubr.bf16.mxu0 %v162_v21 }
  0x56   :  { %519 = vmatprep.subr.bf16.mxu0 %v2030_v20 }
  0x59   :  { %520 = vmatpush1.bf16.msra.mxu0 %v2028_v28 }
  0x5a   :  { %521 = vmatprep.subr.bf16.mxu0 %v2033_v32 }
  0x5c   :  { %507 = vmatmul.mubr.bf16.gmra.mrb[4].mxu0 %v161_v41 }
  0x5d   :  { %522 = vmatpush1.bf16.msra.mxu0 %v2031_v38  ;;  %549 = vmatprep.mubr.bf16.mxu0 %v2245_v43 }
  0x5e   :  { %523 = vmatprep.subr.bf16.mxu0 %v2036_v39 }
  0x61   :  { %524 = vmatpush1.bf16.msra.mxu0 %v2034_v42 }
  0x62   :  { %525 = vmatprep.subr.bf16.mxu0 %v2039_v44 }
  0x65   :  { %526 = vmatpush1.bf16.msra.mxu0 %v2037_v45 }
  0x66   :  { %527 = vmatprep.subr.bf16.mxu0 %v2042_v46 }
  0x69   :  { %528 = vmatpush1.bf16.msra.mxu0 %v2040_v47 }
  0x6a   :  { %529 = vmatprep.subr.bf16.mxu0 %v2045_v48 }
  0x6d   :  { %530 = vmatpush1.bf16.msra.mxu0 %v2043_v50 }
  0x6e   :  { %531 = vmatprep.subr.bf16.mxu0 %v2048_v51 }
  0x71   :  { %532 = vmatpush1.bf16.msra.mxu0 %v2046_v54 }
  0x74   :  { %550 = vmatmul.mubr.bf16.vlgmr.msra.gmra.mrb[0].mxu0 %v160_v40  ;;  %v2090_v40 = vld [vmem:[%s2973_s3 + $0xd0] ss:$8 sps:$4 sm:$0xff]  }
  0x75   :  { %559 = vmatprep.mubr.bf16.mxu0 %v2245_v43  ;;  %1253 = vmatpush1.bf16.msra.mxu1 %v2090_v40 }
  0x76   :  { %1254 = vmatprep.subr.bf16.mxu1 %v2091_v60 }
  0x79   :  { %1255 = vmatpush1.bf16.msra.mxu1 %v2093_v61 }
  0x7a   :  { %1256 = vmatprep.subr.bf16.mxu1 %v2094_v62 }
  0x7c   :  { %560 = vmatmul.mubr.bf16.gmra.mrb[4].mxu0 %v163_v59 }
  0x7d   :  { %1462 = vmatprep.mubr.f32.mxu0 %v2244_v30  ;;  %1257 = vmatpush1.bf16.msra.mxu1 %v2096_v63 }
  0x7e   :  { %1279 = vmatprep.subr.bf16.mxu1 %v2099_v0 }
 0x147   :  { %v551_v7 = vpop.f32.mrb[0].mxu0 }
 0x148   :  { %v1929_v8 = vadd.f32 %v551_v7, %v217_v5  ;;  %v553_v9 = vpop.f32.mrb[1].mxu0 }
 0x149   :  { %v1930_v10 = vadd.f32 %v553_v9, %v221_v6  ;;  %v555_v11 = vpop.f32.mrb[2].mxu0 }
 0x14a   :  { %v2514_v13 = vmax.f32 %v1929_v8, 0.0  ;;  %v1931_v14 = vadd.f32 %v555_v11, %v217_v5  ;;  %v557_v15 = vpop.f32.mrb[3].mxu0 }
 0x14b   :  { %v2516_v17 = vmax.f32 %v1930_v10, 0.0  ;;  %v1932_v19 = vadd.f32 %v557_v15, %v221_v6 }
 0x14c   :  { %v2518_v20 = vmax.f32 %v1931_v14, 0.0  ;;  %v578_v21 = vrot.slane %v2514_v13, 7  ;;  %v602_v24 = vrot.slane %v2514_v13, 1 }
 0x14d   :  { %v2522_v25 = vmax.f32 %v1932_v19, 0.0  ;;  %v603_v26 = vrot.slane %v2516_v17, 1  ;;  %v579_v37 = vrot.slane %v2516_v17, 7 }
 0x14e   :  { %v580_v28 = vrot.slane %v2518_v20, 7  ;;  %v604_v32 = vrot.slane %v2518_v20, 1  ;;  %v628_v33 = vpack.c.bf16 %v2518_v20, %v2514_v13  ;;  %v2151_v13 = vld [vmem:[%s2973_s3 + $0x220] ss:$8 sps:$4 sm:$0xff]   ;;  %v2156_v20 = vld [vmem:[%s2973_s3 + $0x234] ss:$8 sps:$4 sm:$0xff]  }
 0x14f   :  { %v605_v34 = vrot.slane %v2522_v25, 1  ;;  %v561_v36 = vpop.f32.mrb[4].mxu0  ;;  %v581_v38 = vrot.slane %v2522_v25, 7  ;;  %v629_v39 = vpack.c.bf16 %v2522_v25, %v2516_v17  ;;  %v2114_v17 = vld [vmem:[%s2973_s3 + $0x154] ss:$8 sps:$4 sm:$0xff]  }
 0x150   :  { %v2536_v41 = vsel %vm149_vm0, %v602_v24, %v604_v32  ;;  %v1933_v42 = vadd.f32 %v561_v36, %v217_v5  ;;  %v563_v43 = vpop.f32.mrb[5].mxu0  ;;  %v590_v44 = vsel %vm136_vm3, %v578_v21, %v580_v28  ;;  %v2112_v25 = vld [vmem:[%s2973_s3 + $0x150] ss:$8 sps:$4 sm:$0xff]  }
 0x151   :  { %v1934_v45 = vadd.f32 %v563_v43, %v221_v6  ;;  %v565_v46 = vpop.f32.mrb[6].mxu0  ;;  %v591_v47 = vsel %vm136_vm3, %v579_v37, %v581_v38  ;;  %v2544_v48 = vsel %vm149_vm0, %v603_v26, %v605_v34 }
 0x152   :  { %v2546_v49 = vmax.f32 %v1933_v42, 0.0  ;;  %v1935_v50 = vadd.f32 %v565_v46, %v217_v5  ;;  %v567_v51 = vpop.f32.mrb[7].mxu0  ;;  %v2108_v46 = vld [vmem:[%s2973_s3 + $0x134] ss:$8 sps:$4 sm:$0xff]  }
 0x153   :  { %v2548_v53 = vmax.f32 %v1934_v45, 0.0  ;;  %v1936_v54 = vadd.f32 %v567_v51, %v221_v6  ;;  %v2105_v45 = vld [vmem:[%s2973_s3 + $0x124] ss:$8 sps:$4 sm:$0xff]   ;;  %v2109_v51 = vld [vmem:[%s2973_s3 + $0x140] ss:$8 sps:$4 sm:$0xff]  }
 0x154   :  { %v582_v55 = vrot.slane %v2546_v49, 7  ;;  %v606_v57 = vrot.slane %v2546_v49, 1  ;;  %v2552_v58 = vmax.f32 %v1935_v50, 0.0  ;;  %v2111_v50 = vld [vmem:[%s2973_s3 + $0x144] ss:$8 sps:$4 sm:$0xff]  }
 0x155   :  { %v583_v52 = vrot.slane %v2548_v53, 7  ;;  %v607_v59 = vrot.slane %v2548_v53, 1  ;;  %v2556_v16 = vmax.f32 %v1936_v54, 0.0  ;;  %v2115_v54 = vld [vmem:[%s2973_s3 + $0x160] ss:$8 sps:$4 sm:$0xff]  }
 0x156   :  { %v612_v18 = vsel %vm149_vm0, %v604_v32, %v606_v57  ;;  %v584_v23 = vrot.slane %v2552_v58, 7  ;;  %v608_v27 = vrot.slane %v2552_v58, 1  ;;  %v588_v29 = vsel %vm136_vm3, %v580_v28, %v582_v55 }
 0x157   :  { %v2565_v35 = vmul.f32 %v2347_v31, %v612_v18  ;;  %v585_v40 = vrot.slane %v2556_v16, 7  ;;  %v609_v60 = vrot.slane %v2556_v16, 1  ;;  %v589_v61 = vsel %vm136_vm3, %v581_v38, %v583_v52  ;;  %v2126_v18 = vld [vmem:[%s2973_s3 + $0x194] ss:$8 sps:$4 sm:$0xff]  }
 0x158   :  { %v592_v62 = vsel %vm136_vm3, %v584_v23, %v578_v21  ;;  %v599_v63 = vmul.f32 %v2432_v22, %v589_v61  ;;  %v586_v0 = vsel %vm136_vm3, %v582_v55, %v584_v23  ;;  %v598_v2 = vmul.f32 %v2432_v22, %v588_v29  ;;  %v2120_v55 = vld [vmem:[%s2973_s3 + $0x174] ss:$8 sps:$4 sm:$0xff]   ;;  %v2124_v23 = vld [vmem:[%s2973_s3 + $0x190] ss:$8 sps:$4 sm:$0xff]   ;;  %v2127_v29 = vld [vmem:[%s2973_s3 + $0x1a0] ss:$8 sps:$4 sm:$0xff]  }
 0x159   :  { %v593_v5 = vsel %vm136_vm3, %v585_v40, %v579_v37  ;;  %v594_v6 = vmul.f32 %v2409_v3, %v592_v62  ;;  %v587_v7 = vsel %vm136_vm3, %v583_v52, %v585_v40  ;;  %v635_v8 = vpack.c.bf16 %v2556_v16, %v2548_v53  ;;  %v2102_v37 = vld [vmem:[%s2973_s3 + $0x114] ss:$8 sps:$4 sm:$0xff]   ;;  %v2123_v52 = vld [vmem:[%s2973_s3 + $0x184] ss:$8 sps:$4 sm:$0xff]   ;;  %v2133_v62 = vld [vmem:[%s2973_s3 + $0x1c0] ss:$8 sps:$4 sm:$0xff]  }
 0x15a   :  { %v595_v9 = vmul.f32 %v2409_v3, %v593_v5  ;;  %v633_v10 = vpack.c.bf16 %v587_v7, %v599_v63  ;;  %v632_v11 = vpack.c.bf16 %v586_v0, %v598_v2  ;;  %v634_v14 = vpack.c.bf16 %v2552_v58, %v2546_v49  ;;  %v2097_v3 = vld [vmem:[%s2973_s3 + $0x100] ss:$8 sps:$4 sm:$0xff]   ;;  %v2132_v40 = vld [vmem:[%s2973_s3 + $0x1b4] ss:$8 sps:$4 sm:$0xff]   ;;  %v2135_v61 = vld [vmem:[%s2973_s3 + $0x1c4] ss:$8 sps:$4 sm:$0xff]  }
 0x15b   :  { %v626_v15 = vpack.c.bf16 %v590_v44, %v594_v6  ;;  %v613_v22 = vsel %vm149_vm0, %v605_v34, %v607_v59  ;;  %v630_v19 = vpack.c.bf16 %v2565_v35, %v2536_v41  ;;  %v2593_v21 = vsel %vm149_vm0, %v607_v59, %v609_v60  ;;  %v2100_v44 = vld [vmem:[%s2973_s3 + $0x110] ss:$8 sps:$4 sm:$0xff]   ;;  %v2121_v59 = vld [vmem:[%s2973_s3 + $0x180] ss:$8 sps:$4 sm:$0xff]   ;;  %v2138_v63 = vld [vmem:[%s2973_s3 + $0x1d4] ss:$8 sps:$4 sm:$0xff]  }
 0x15c   :  { %v627_v28 = vpack.c.bf16 %v591_v47, %v595_v9  ;;  %v2599_v32 = vmul.f32 %v2347_v31, %v613_v22  ;;  %v617_v36 = vsel %vm149_vm0, %v609_v60, %v603_v26  ;;  %v2605_v34 = vsel %vm149_vm0, %v606_v57, %v608_v27  ;;  %v2106_v47 = vld [vmem:[%s2973_s3 + $0x130] ss:$8 sps:$4 sm:$0xff]   ;;  %v2141_v2 = vld [vmem:[%s2973_s3 + $0x1e4] ss:$8 sps:$4 sm:$0xff]   ;;  %v2139_v5 = vld [vmem:[%s2973_s3 + $0x1e0] ss:$8 sps:$4 sm:$0xff]  }
 0x15d   :  { %v2611_v38 = vmul.f32 %v2454_v56, %v617_v36  ;;  %v616_v42 = vsel %vm149_vm0, %v608_v27, %v602_v24  ;;  %v2118_v57 = vld [vmem:[%s2973_s3 + $0x170] ss:$8 sps:$4 sm:$0xff]   ;;  %v2129_v27 = vld [vmem:[%s2973_s3 + $0x1a4] ss:$8 sps:$4 sm:$0xff]   ;;  %v2144_v6 = vld [vmem:[%s2973_s3 + $0x1f4] ss:$8 sps:$4 sm:$0xff]  }
 0x15e   :  { %1258 = vmatprep.mubr.bf16.mxu1 %v627_v28  ;;  %v631_v31 = vpack.c.bf16 %v2599_v32, %v2544_v48  ;;  %v2618_v26 = vmul.f32 %v2454_v56, %v616_v42  ;;  %v2103_v56 = vld [vmem:[%s2973_s3 + $0x120] ss:$8 sps:$4 sm:$0xff]   ;;  %v2130_v60 = vld [vmem:[%s2973_s3 + $0x1b0] ss:$8 sps:$4 sm:$0xff]   ;;  %v2147_v9 = vld [vmem:[%s2973_s3 + $0x204] ss:$8 sps:$4 sm:$0xff]  }
 0x15f   :  { %1259 = vmatmul.mubr.bf16.vlgmr.msra.gmra.mrb[0].mxu1 %v626_v15  ;;  %v637_v43 = vpack.c.bf16 %v2611_v38, %v2593_v21  ;;  %v2136_v0 = vld [vmem:[%s2973_s3 + $0x1d0] ss:$8 sps:$4 sm:$0xff]   ;;  %v2153_v22 = vld [vmem:[%s2973_s3 + $0x224] ss:$8 sps:$4 sm:$0xff]   ;;  %v2157_v49 = vld [vmem:[%s2973_s3 + $0x240] ss:$8 sps:$4 sm:$0xff]  }
 0x160   :  { %1280 = vmatpush1.bf16.msra.mxu1 %v2097_v3  ;;  %1268 = vmatprep.mubr.bf16.mxu1 %v633_v10  ;;  %v636_v24 = vpack.c.bf16 %v2618_v26, %v2605_v34  ;;  %v2142_v7 = vld [vmem:[%s2973_s3 + $0x1f0] ss:$8 sps:$4 sm:$0xff]   ;;  %v2145_v10 = vld [vmem:[%s2973_s3 + $0x200] ss:$8 sps:$4 sm:$0xff]   ;;  %v2159_v53 = vld [vmem:[%s2973_s3 + $0x244] ss:$8 sps:$4 sm:$0xff]  }
 0x161   :  { %1281 = vmatprep.subr.bf16.mxu1 %v2102_v37  ;;  %v2148_v15 = vld [vmem:[%s2973_s3 + $0x210] ss:$8 sps:$4 sm:$0xff]   ;;  %v2162_v48 = vld [vmem:[%s2973_s3 + $0x254] ss:$8 sps:$4 sm:$0xff]   ;;  %v2165_v16 = vld [vmem:[%s2973_s3 + $0x264] ss:$8 sps:$4 sm:$0xff]  }
 0x162   :  { %v2160_v58 = vld [vmem:[%s2973_s3 + $0x250] ss:$8 sps:$4 sm:$0xff]   ;;  %v2171_v3 = vld [vmem:[%s2973_s3 + $0x284] ss:$8 sps:$4 sm:$0xff]   ;;  %v2169_v32 = vld [vmem:[%s2973_s3 + $0x280] ss:$8 sps:$4 sm:$0xff]  }
 0x163   :  { %v2166_v28 = vld [vmem:[%s2973_s3 + $0x270] ss:$8 sps:$4 sm:$0xff]   ;;  %v2174_v36 = vld [vmem:[%s2973_s3 + $0x294] ss:$8 sps:$4 sm:$0xff]   ;;  %v2177_v42 = vld [vmem:[%s2973_s3 + $0x2a4] ss:$8 sps:$4 sm:$0xff]  }
 0x164   :  { %1282 = vmatpush1.bf16.msra.mxu1 %v2100_v44  ;;  %v2172_v37 = vld [vmem:[%s2973_s3 + $0x290] ss:$8 sps:$4 sm:$0xff]   ;;  %v2180_v44 = vld [vmem:[%s2973_s3 + $0x2b4] ss:$8 sps:$4 sm:$0xff]  }
 0x165   :  { %1283 = vmatprep.subr.bf16.mxu1 %v2105_v45  ;;  %v2178_v45 = vld [vmem:[%s2973_s3 + $0x2b0] ss:$8 sps:$4 sm:$0xff]  }
 0x167   :  { %1269 = vmatmul.mubr.bf16.gmra.mrb[4].mxu1 %v632_v11  ;;  %v2150_v11 = vld [vmem:[%s2973_s3 + $0x214] ss:$8 sps:$4 sm:$0xff]  }
 0x168   :  { %1284 = vmatpush1.bf16.msra.mxu1 %v2103_v56  ;;  %1311 = vmatprep.mubr.bf16.mxu1 %v629_v39  ;;  %v2117_v39 = vld [vmem:[%s2973_s3 + $0x164] ss:$8 sps:$4 sm:$0xff]  }
 0x169   :  { %1285 = vmatprep.subr.bf16.mxu1 %v2108_v46  ;;  %v2183_v56 = vld [vmem:[%s2973_s3 + $0x2c4] ss:$8 sps:$4 sm:$0xff]   ;;  %v2181_v46 = vld [vmem:[%s2973_s3 + $0x2c0] ss:$8 sps:$4 sm:$0xff]  }
 0x16c   :  { %1286 = vmatpush1.bf16.msra.mxu1 %v2106_v47  ;;  %v2186_v47 = vld [vmem:[%s2973_s3 + $0x2d4] ss:$8 sps:$4 sm:$0xff]  }
 0x16d   :  { %1287 = vmatprep.subr.bf16.mxu1 %v2111_v50  ;;  %v2184_v50 = vld [vmem:[%s2973_s3 + $0x2d0] ss:$8 sps:$4 sm:$0xff]  }
 0x170   :  { %1288 = vmatpush1.bf16.msra.mxu1 %v2109_v51  ;;  %v2189_v51 = vld [vmem:[%s2973_s3 + $0x2e4] ss:$8 sps:$4 sm:$0xff]  }
 0x171   :  { %1289 = vmatprep.subr.bf16.mxu1 %v2114_v17  ;;  %v2187_v17 = vld [vmem:[%s2973_s3 + $0x2e0] ss:$8 sps:$4 sm:$0xff]  }
 0x174   :  { %1290 = vmatpush1.bf16.msra.mxu1 %v2112_v25  ;;  %v2192_v25 = vld [vmem:[%s2973_s3 + $0x2f4] ss:$8 sps:$4 sm:$0xff]  }
 0x175   :  { %1291 = vmatprep.subr.bf16.mxu1 %v2117_v39  ;;  %v2190_v39 = vld [vmem:[%s2973_s3 + $0x2f0] ss:$8 sps:$4 sm:$0xff]  }
 0x178   :  { %1292 = vmatpush1.bf16.msra.mxu1 %v2115_v54  ;;  %v734_v54 = vld [vmem:[%s2974_s4] sm:$0x3] }
 0x179   :  { %1293 = vmatprep.subr.bf16.mxu1 %v2120_v55  ;;  %v739_v55 = vrot.slane %v734_v54, %v216_v1 }
 0x17c   :  { %1294 = vmatpush1.bf16.msra.mxu1 %v2118_v57  ;;  %v743_v57 = vrot.slane %v734_v54, %v220_v4 }
 0x17d   :  { %1295 = vmatprep.subr.bf16.mxu1 %v2123_v52 }
 0x180   :  { %1296 = vmatpush1.bf16.msra.mxu1 %v2121_v59 }
 0x181   :  { %1297 = vmatprep.subr.bf16.mxu1 %v2126_v18 }
 0x184   :  { %1298 = vmatpush1.bf16.msra.mxu1 %v2124_v23 }
 0x185   :  { %1299 = vmatprep.subr.bf16.mxu1 %v2129_v27 }
 0x188   :  { %1300 = vmatpush1.bf16.msra.mxu1 %v2127_v29 }
 0x189   :  { %1301 = vmatprep.subr.bf16.mxu1 %v2132_v40 }
 0x18c   :  { %1302 = vmatpush1.bf16.msra.mxu1 %v2130_v60 }
 0x18d   :  { %1303 = vmatprep.subr.bf16.mxu1 %v2135_v61 }
 0x190   :  { %1304 = vmatpush1.bf16.msra.mxu1 %v2133_v62 }
 0x191   :  { %1305 = vmatprep.subr.bf16.mxu1 %v2138_v63 }
 0x194   :  { %1306 = vmatpush1.bf16.msra.mxu1 %v2136_v0 }
 0x195   :  { %1307 = vmatprep.subr.bf16.mxu1 %v2141_v2  ;;  %v1485_v2 = vld [vmem:[%s2976_s6 + $0x80] sm:$0xff] }
 0x198   :  { %1308 = vmatpush1.bf16.msra.mxu1 %v2139_v5  ;;  %v1486_v5 = vld [vmem:[%s2976_s6 + $0x88] sm:$0xff] }
 0x199   :  { %1309 = vmatprep.subr.bf16.mxu1 %v2144_v6 }
 0x19c   :  { %1310 = vmatpush1.bf16.msra.mxu1 %v2142_v7 }
 0x19d   :  { %1332 = vmatprep.subr.bf16.mxu1 %v2147_v9 }
 0x19f   :  { %1312 = vmatmul.mubr.bf16.vlgmr.msra.gmra.mrb[0].mxu1 %v628_v33  ;;  %v2154_v33 = vld [vmem:[%s2973_s3 + $0x230] ss:$8 sps:$4 sm:$0xff]  }
 0x1a0   :  { %1321 = vmatprep.mubr.bf16.mxu1 %v635_v8  ;;  %1333 = vmatpush1.bf16.msra.mxu1 %v2145_v10  ;;  %v2163_v8 = vld [vmem:[%s2973_s3 + $0x260] ss:$8 sps:$4 sm:$0xff]  }
 0x1a1   :  { %1334 = vmatprep.subr.bf16.mxu1 %v2150_v11  ;;  %v1891_v11 = vpack.c.bf16 %v1486_v5, %v1485_v2  ;;  %v1829_v2 = vld [vmem:[%s2977_s7] ss:$0 sm:$0xff] }
 0x1a4   :  { %1335 = vmatpush1.bf16.msra.mxu1 %v2148_v15  ;;  %v1469_v15 = vld [vmem:[%s2976_s6] sm:$0xff] }
 0x1a5   :  { %1336 = vmatprep.subr.bf16.mxu1 %v2153_v22  ;;  %v1470_v22 = vld [vmem:[%s2976_s6 + $0x8] sm:$0xff] }
 0x1a7   :  { %1322 = vmatmul.mubr.bf16.gmra.mrb[4].mxu1 %v634_v14  ;;  %v2168_v14 = vld [vmem:[%s2973_s3 + $0x274] ss:$8 sps:$4 sm:$0xff]  }
 0x1a8   :  { %1337 = vmatpush1.bf16.msra.mxu1 %v2151_v13  ;;  %1364 = vmatprep.mubr.bf16.mxu1 %v631_v31  ;;  %v2175_v31 = vld [vmem:[%s2973_s3 + $0x2a0] ss:$8 sps:$4 sm:$0xff]   ;;  %v1487_v13 = vld [vmem:[%s2976_s6 + $0x90] sm:$0xff] }
 0x1a9   :  { %1338 = vmatprep.subr.bf16.mxu1 %v2156_v20  ;;  %v1488_v20 = vld [vmem:[%s2976_s6 + $0x98] sm:$0xff] }
 0x1ac   :  { %1339 = vmatpush1.bf16.msra.mxu1 %v2154_v33  ;;  %v1393_v33 = vld [vmem:[%s2975_s5] sm:$0x3] }
 0x1ad   :  { %1340 = vmatprep.subr.bf16.mxu1 %v2159_v53  ;;  %v1893_v53 = vpack.c.bf16 %v1470_v22, %v1469_v15 }
 0x1b0   :  { %1341 = vmatpush1.bf16.msra.mxu1 %v2157_v49  ;;  %v1895_v49 = vpack.c.bf16 %v1488_v20, %v1487_v13 }
 0x1b1   :  { %1342 = vmatprep.subr.bf16.mxu1 %v2162_v48  ;;  %v1471_v48 = vld [vmem:[%s2976_s6 + $0x10] sm:$0xff] }
 0x1b4   :  { %1343 = vmatpush1.bf16.msra.mxu1 %v2160_v58  ;;  %v1472_v58 = vld [vmem:[%s2976_s6 + $0x18] sm:$0xff] }
 0x1b5   :  { %1344 = vmatprep.subr.bf16.mxu1 %v2165_v16  ;;  %v1489_v16 = vld [vmem:[%s2976_s6 + $0xa0] sm:$0xff] }
 0x1b8   :  { %1345 = vmatpush1.bf16.msra.mxu1 %v2163_v8  ;;  %v1490_v8 = vld [vmem:[%s2976_s6 + $0xa8] sm:$0xff] }
 0x1b9   :  { %1346 = vmatprep.subr.bf16.mxu1 %v2168_v14  ;;  %v1897_v14 = vpack.c.bf16 %v1472_v58, %v1471_v48 }
 0x1bc   :  { %1347 = vmatpush1.bf16.msra.mxu1 %v2166_v28  ;;  %v1899_v28 = vpack.c.bf16 %v1490_v8, %v1489_v16 }
 0x1bd   :  { %1348 = vmatprep.subr.bf16.mxu1 %v2171_v3  ;;  %v1473_v3 = vld [vmem:[%s2976_s6 + $0x20] sm:$0xff] }
 0x1c0   :  { %1349 = vmatpush1.bf16.msra.mxu1 %v2169_v32  ;;  %v1474_v32 = vld [vmem:[%s2976_s6 + $0x28] sm:$0xff] }
 0x1c1   :  { %1350 = vmatprep.subr.bf16.mxu1 %v2174_v36  ;;  %v1491_v36 = vld [vmem:[%s2976_s6 + $0xb0] sm:$0xff] }
 0x1c4   :  { %1351 = vmatpush1.bf16.msra.mxu1 %v2172_v37  ;;  %v1492_v37 = vld [vmem:[%s2976_s6 + $0xb8] sm:$0xff] }
 0x1c5   :  { %1352 = vmatprep.subr.bf16.mxu1 %v2177_v42  ;;  %v1901_v42 = vpack.c.bf16 %v1474_v32, %v1473_v3 }
 0x1c8   :  { %1353 = vmatpush1.bf16.msra.mxu1 %v2175_v31  ;;  %v1903_v31 = vpack.c.bf16 %v1492_v37, %v1491_v36 }
 0x1c9   :  { %1354 = vmatprep.subr.bf16.mxu1 %v2180_v44  ;;  %v1475_v44 = vld [vmem:[%s2976_s6 + $0x30] sm:$0xff] }
 0x1cc   :  { %1355 = vmatpush1.bf16.msra.mxu1 %v2178_v45  ;;  %v1476_v45 = vld [vmem:[%s2976_s6 + $0x38] sm:$0xff] }
 0x1cd   :  { %1356 = vmatprep.subr.bf16.mxu1 %v2183_v56  ;;  %v1493_v56 = vld [vmem:[%s2976_s6 + $0xc0] sm:$0xff] }
 0x1d0   :  { %1357 = vmatpush1.bf16.msra.mxu1 %v2181_v46  ;;  %v1494_v46 = vld [vmem:[%s2976_s6 + $0xc8] sm:$0xff] }
 0x1d1   :  { %1358 = vmatprep.subr.bf16.mxu1 %v2186_v47  ;;  %v1905_v47 = vpack.c.bf16 %v1476_v45, %v1475_v44 }
 0x1d4   :  { %1359 = vmatpush1.bf16.msra.mxu1 %v2184_v50  ;;  %v1907_v50 = vpack.c.bf16 %v1494_v46, %v1493_v56 }
 0x1d5   :  { %1360 = vmatprep.subr.bf16.mxu1 %v2189_v51  ;;  %v1477_v51 = vld [vmem:[%s2976_s6 + $0x40] sm:$0xff] }
 0x1d8   :  { %1361 = vmatpush1.bf16.msra.mxu1 %v2187_v17  ;;  %v1478_v17 = vld [vmem:[%s2976_s6 + $0x48] sm:$0xff] }
 0x1d9   :  { %1362 = vmatprep.subr.bf16.mxu1 %v2192_v25  ;;  %v1495_v25 = vld [vmem:[%s2976_s6 + $0xd0] sm:$0xff]  ;;  %v1909_v54 = vpack.c.bf16 %v1478_v17, %v1477_v51 }
 0x1dc   :  { %1363 = vmatpush1.bf16.msra.mxu1 %v2190_v39  ;;  %v1496_v39 = vld [vmem:[%s2976_s6 + $0xd8] sm:$0xff] }
 0x1df   :  { %1365 = vmatmul.mubr.bf16.vlgmr.msra.gmra.mrb[0].mxu1 %v630_v19 }
 0x1e0   :  { %1374 = vmatprep.mubr.bf16.mxu1 %v637_v43 }
 0x1e7   :  { %1375 = vmatmul.mubr.bf16.gmra.mrb[4].mxu1 %v636_v24 }
 0x2b2   :  { %v1366_v41 = vpop.f32.mrb[0].mxu1 }
 0x2b3   :  { %v1937_v35 = vadd.f32 %v1366_v41, %v739_v55  ;;  %v1368_v19 = vpop.f32.mrb[1].mxu1  ;;  %v1480_v41 = vld [vmem:[%s2976_s6 + $0x58] sm:$0xff] }
 0x2b4   :  { %v1938_v52 = vadd.f32 %v1368_v19, %v743_v57  ;;  %v1370_v21 = vpop.f32.mrb[2].mxu1  ;;  %v1498_v19 = vld [vmem:[%s2976_s6 + $0xe8] sm:$0xff] }
 0x2b5   :  { %v1939_v38 = vadd.f32 %v1370_v21, %v739_v55  ;;  %v1372_v43 = vpop.f32.mrb[3].mxu1  ;;  %v1385_v34 = vmax.f32 %v1937_v35, 0.0  ;;  %v1497_v35 = vld [vmem:[%s2976_s6 + $0xe0] sm:$0xff] }
 0x2b6   :  { %v1940_v59 = vadd.f32 %v1372_v43, %v743_v57  ;;  %v1386_v24 = vmax.f32 %v1938_v52, 0.0  ;;  %v1915_v21 = vpack.c.bf16 %v1498_v19, %v1497_v35  ;;  %v1482_v43 = vld [vmem:[%s2976_s6 + $0x68] sm:$0xff] }
 0x2b7   :  { %v1387_v26 = vmax.f32 %v1939_v38, 0.0  ;;  %v1481_v38 = vld [vmem:[%s2976_s6 + $0x60] sm:$0xff] }
 0x2b8   :  { %v1388_v18 = vmax.f32 %v1940_v59, 0.0  ;;  %v1499_v59 = vld [vmem:[%s2976_s6 + $0xf0] sm:$0xff] }
 0x2b9   :  { %v1885_v23 = vpack.c.bf16 %v1387_v26, %v1385_v34  ;;  %v1500_v34 = vld [vmem:[%s2976_s6 + $0xf8] sm:$0xff]  ;;  %v1917_v26 = vpack.c.bf16 %v1482_v43, %v1481_v38 }
 0x2ba   :  { %v1883_v27 = vpack.c.bf16 %v1388_v18, %v1386_v24  ;;  %v1376_v29 = vpop.f32.mrb[4].mxu1  ;;  %v1919_v24 = vpack.c.bf16 %v1500_v34, %v1499_v59  ;;  %v1483_v18 = vld [vmem:[%s2976_s6 + $0x70] sm:$0xff] }
 0x2bb   :  { %v1941_v40 = vadd.f32 %v1376_v29, %v739_v55  ;;  %v1378_v1 = vpop.f32.mrb[5].mxu1 }
 0x2bc   :  { %v1942_v60 = vadd.f32 %v1378_v1, %v743_v57  ;;  %v1380_v12 = vpop.f32.mrb[6].mxu1  ;;  %1884 = vmatprep.subr.bf16.mxu0 %v1883_v27  ;;  %v2246_v1 = vmov 0.0|0.0  }
 0x2bd   :  { %v1943_v4 = vadd.f32 %v1380_v12, %v739_v55  ;;  %v1382_v61 = vpop.f32.mrb[7].mxu1  ;;  %1886 = vmatpush1.bf16.msra.mxu0 %v1885_v23  ;;  %v1389_v63 = vmax.f32 %v1941_v40, 0.0  ;;  %v1911_v55 = vpack.c.bf16 %v1496_v39, %v1495_v25  ;;  %v1484_v23 = vld [vmem:[%s2976_s6 + $0x78] sm:$0xff]  ;;  %v1580_v12 = vld [vmem:[%s2978_s8 + $0x8] sm:$0xff] }
 0x2be   :  { %v1944_v62 = vadd.f32 %v1382_v61, %v743_v57  ;;  %v1390_v6 = vmax.f32 %v1942_v60, 0.0  ;;  %v1479_v57 = vld [vmem:[%s2976_s6 + $0x50] sm:$0xff]  ;;  %v1921_v27 = vpack.c.bf16 %v1484_v23, %v1483_v18  ;;  %v1579_v60 = vld [vmem:[%s2978_s8] sm:$0xff] }
 0x2bf   :  { %v1391_v0 = vmax.f32 %v1943_v4, 0.0  ;;  %v1913_v52 = vpack.c.bf16 %v1480_v41, %v1479_v57  ;;  %v1924_v4 = vpack.c.bf16 %v1580_v12, %v1579_v60  ;;  %v1581_v61 = vld [vmem:[%s2978_s8 + $0x10] sm:$0xff] }
 0x2c0   :  { %v1392_v7 = vmax.f32 %v1944_v62, 0.0  ;;  %v1582_v62 = vld [vmem:[%s2978_s8 + $0x18] sm:$0xff]  ;;  %s2248_s8 = smov [#allocation5]  }
 0x2c1   :  { %v1889_v9 = vpack.c.bf16 %v1391_v0, %v1389_v63  ;;  %v1927_v63 = vpack.c.bf16 %v1582_v62, %v1581_v61  ;;  %s1671_s1 = sshll.u32 %s2248_s8, 4  ;;  %s1672_s1 = int_to_ptr.vmem [resolvable:$true] %s1671_s1 }
 0x2c2   :  { %v1887_v10 = vpack.c.bf16 %v1392_v7, %v1390_v6  ;;  %s2215_s3 = scalar_lea.vmem %s1672_s1, 32  ;;  %p2220_p9 = scmp.lt.s32.totalorder %s1672_s1, %s1672_s1 }
 0x2c3   :  { %p2216_p8 = scmp.ne.s32.totalorder %s1672_s1, %s2215_s3  ;;  %p2221_p10 = scmp.lt.s32.totalorder %s2215_s3, %s2215_s3 }
 0x2c4   :  { %1888 = vmatprep.subr.bf16.mxu0 %v1887_v10  ;;  %v1830_v10 = vld [vmem:[%s2979_s9] ss:$0 sm:$0xff] }
 0x2c5   :  { %1890 = vmatpush1.bf16.msra.mxu0 %v1889_v9  ;;  %p2222_p11 = por %p2221_p10, %p2220_p9 }
 0x2c6   :  { %1892 = vmatprep.subr.bf16.mxu0 %v1891_v11 }
 0x2c7   :  { %p2223_p12 = pnand %p2222_p11, %p2216_p8 }
 0x2c8   :  { %1828 = vmatmul.mubr.msk.f32.vlgmr.msra.gmra.mrb[8].mxu0 %vm1394_vm6, %v1393_v33 }
 0x2c9   :  { %1894 = vmatpush3.bf16.msra.mxu0 %v1893_v53 }
 0x2ca   :  { %1896 = vmatprep.subr.bf16.mxu0 %v1895_v49 }
 0x2cd   :  { %1898 = vmatpush3.bf16.msra.mxu0 %v1897_v14 }
 0x2ce   :  { %1900 = vmatprep.subr.bf16.mxu0 %v1899_v28 }
 0x2d1   :  { %1902 = vmatpush3.bf16.msra.mxu0 %v1901_v42 }
 0x2d2   :  { %1904 = vmatprep.subr.bf16.mxu0 %v1903_v31 }
 0x2d5   :  { %1906 = vmatpush3.bf16.msra.mxu0 %v1905_v47 }
 0x2d6   :  { %1908 = vmatprep.subr.bf16.mxu0 %v1907_v50 }
 0x2d9   :  { %1910 = vmatpush3.bf16.msra.mxu0 %v1909_v54 }
 0x2da   :  { %1912 = vmatprep.subr.bf16.mxu0 %v1911_v55 }
 0x2dd   :  { %1914 = vmatpush3.bf16.msra.mxu0 %v1913_v52 }
 0x2de   :  { %1916 = vmatprep.subr.bf16.mxu0 %v1915_v21 }
 0x2e1   :  { %1918 = vmatpush3.bf16.msra.mxu0 %v1917_v26 }
 0x2e2   :  { %1920 = vmatprep.subr.bf16.mxu0 %v1919_v24 }
 0x2e5   :  { %1922 = vmatpush3.bf16.msra.mxu0 %v1921_v27 }
 0x2e6   :  { %1923 = vmatprep.subr.bf16.mxu0 %v2246_v1 }
 0x39b   :  { %v1464_v29 = vpop.f32.mrb[8].mxu0 }
 0x39c   :  { %v1466_v40 = vpop.f32.mrb[9].mxu0 }
 0x39d   :  { %1572 = vmatprep.mubr.f32.mxu0 %v1466_v40 }
 0x39e   :  { %1573 = vmatmul.mubr.f32.vlgmr.msra.gmra.mrb[10].mxu0 %v1464_v29 }
 0x39f   :  { %1925 = vmatpush3.bf16.msra.mxu0 %v1924_v4  ;;  %1880 = vmatprep.mubr.msk.f32.mxu0 %vm2247_vm7, %v2244_v30 }
 0x3a0   :  { %1926 = vmatprep.subr.bf16.mxu0 %v2246_v1 }
 0x3a3   :  { %1928 = vmatpush3.bf16.msra.mxu0 %v1927_v63 }
 0x471   :  { %v1864_v0 = vpop.f32.mrb[10].mxu0 }
 0x472   :  { %v1865_v5 = vpop.f32.mrb[11].mxu0 }
 0x473   :  { %v1866_v6 = vadd.f32 %v1865_v5, %v1864_v0 }
 0x475   :  { %v1575_v7 = vadd.f32 %v1866_v6, %v1829_v2 }
 0x477   :  { %v1578_v9 = vmax.f32 %v1575_v7, 0.0 }
 0x479   :  { %1881 = vmatmul.mubr.msk.f32.vlgmr.msra.gmra.mrb[12].mxu0 %vm1394_vm6, %v1578_v9 }
 0x54c   :  { %v1659_v11 = vpop.f32.mrb[12].mxu0 }
 0x54d   :  { %v1660_v30 = vadd.f32 %v1830_v10, %v1659_v11  ;;  %v1882_v15 = vpop.f32.mrb[13].mxu0 }
 0x54f   :  { %1664 = vst.msk [vmem:[#allocation5] sm:$0x3] %vm1663_vm8, %v1660_v30 }
 0x550   :  { %2226 = shalt.err (!%p2223_p12)
}
 0x551   :  { %s2227_s27 = scalar_lea.hbm %s2980_s10, 32 }
 0x552   :  { %p2228_p13 = scmp.ne.s32.totalorder %s2980_s10, %s2227_s27  ;;  %p2231_p0 = scmp.lt.u32.totalorder %s2227_s27, %s2980_s10 }
 0x554   :  { %p2233_p1 = pnand %p2231_p0, %p2228_p13 }
 0x556   :  { %2236 = shalt.err (!%p2233_p1)
}
 0x557   :  { %1674 = dma.vmem_to_hbm [thread:$0]  %s1672_s1, 32, %s2980_s10, [#allocation4]  }
 0x558   :  { %2239 = dma.done.wait [#allocation4], 32  }
 0x559   :  { %2240 = vsyncadd [#allocation4], 4294967264 }
 0x55a   :  { %1678 = vsyncpa [#allocation3], 1 }
 0x55b   :  { %1679 = vsyncpa [#allocation4], 1 }

</bundles_post_ra>
